<compile_context>
chip_gen: v6e
topology: v6e:2x2x1
jax: 0.10.0
libtpu: 0.0.40
codegen_flags: <defaults>
</compile_context>

<pallas_src>
import functools

import jax
import jax.numpy as jnp
from jax.experimental import pallas as pl
from jax.experimental.pallas import tpu as pltpu

_LANES = 128


def _fused_kernel(x_ref, w1_ref, b1_ref, w2_ref, b2_ref, o_ref, *,
                  cin, cmid, cout, min_value, max_value):
    # x_ref:  (1, Cin,  Rt, 128) VMEM tile (pixels dense on sublanes+lanes)
    # o_ref:  (1, Cout, Rt, 128) VMEM tile
    # w1_ref: (Cin, Cmid) SMEM, b1_ref: (Cmid,) SMEM
    # w2_ref: (Cmid, Cout) SMEM, b2_ref: (Cout,) SMEM

    # First pointwise conv + clamp, fully unrolled on the VPU.
    hs = []
    for m in range(cmid):
        acc = x_ref[0, 0] * w1_ref[0, m]
        for c in range(1, cin):
            acc = acc + x_ref[0, c] * w1_ref[c, m]
        acc = acc + b1_ref[m]
        hs.append(jnp.clip(acc, min_value, max_value))  # (Rt, 128)

    # Second pointwise conv; each output channel stored directly (no concat).
    for o in range(cout):
        y = hs[0] * w2_ref[0, o]
        for m in range(1, cmid):
            y = y + hs[m] * w2_ref[m, o]
        o_ref[0, o] = (y + b2_ref[o]).astype(o_ref.dtype)


def fused_forward(x_nchw, w1_t, b1, w2_t, b2, *, min_value=6.1, max_value=6.2):
    """Fused 1x1 ConvTranspose2d -> clamp -> 1x1 Conv2d.

    x_nchw: (N, Cin, H, W) float32
    w1_t:   torch ConvTranspose2d weight, shape (Cin, Cmid, 1, 1)
    b1:     (Cmid,)
    w2_t:   torch Conv2d weight, shape (Cout, Cmid, 1, 1)
    b2:     (Cout,)
    """
    N, Cin, H, W = x_nchw.shape
    Cmid = w1_t.shape[1]
    Cout = w2_t.shape[0]
    HW = H * W

    # torch layouts -> channel-contraction matrices.
    w1 = w1_t.reshape(Cin, Cmid).astype(jnp.float32)                    # y_m = sum_c w1[c,m]*x_c
    w2 = jnp.transpose(w2_t.reshape(Cout, Cmid)).astype(jnp.float32)    # (Cmid, Cout)

    # Pixels -> dense (rows, 128) slab so loads/stores are full, unmasked vregs.
    hw_pad = ((HW + _LANES - 1) // _LANES) * _LANES
    x_rows = x_nchw.reshape(N, Cin, HW)
    if hw_pad != HW:
        x_rows = jnp.pad(x_rows, ((0, 0), (0, 0), (0, hw_pad - HW)))
    nr = hw_pad // _LANES
    x4 = x_rows.reshape(N, Cin, nr, _LANES)

    # Biggest row tile that fits the double-buffered VMEM budget (in + out),
    # capped so it stays safe on v7x's 64 MiB per-TC VMEM.
    vmem_budget = 24 * 1024 * 1024
    max_rows = vmem_budget // (2 * (Cin + Cout) * _LANES * 4)
    r_cap = min(4096, max(8, (max_rows // 8) * 8))
    r_tile = nr if nr <= r_cap else r_cap          # full extent or multiple of 8
    num_tiles = pl.cdiv(nr, r_tile)                # ragged last tile is masked

    kernel = functools.partial(
        _fused_kernel, cin=Cin, cmid=Cmid, cout=Cout,
        min_value=float(min_value), max_value=float(max_value))

    flops = 2 * N * HW * (Cin * Cmid + Cmid * Cout)
    bytes_accessed = (4 * N * HW * (Cin + Cout)
                      + 4 * (Cin * Cmid + Cmid + Cmid * Cout + Cout))

    out4 = pl.pallas_call(
        kernel,
        out_shape=jax.ShapeDtypeStruct((N, Cout, nr, _LANES), jnp.float32),
        grid_spec=pltpu.PrefetchScalarGridSpec(
            num_scalar_prefetch=0,
            grid=(N, num_tiles),
            in_specs=[
                # activations: pipelined, lane+sublane dense
                pl.BlockSpec((1, Cin, r_tile, _LANES), lambda n, i: (n, 0, i, 0)),
                # tiny weights/biases: resident scalars in SMEM
                pl.BlockSpec(memory_space=pltpu.MemorySpace.SMEM),
                pl.BlockSpec(memory_space=pltpu.MemorySpace.SMEM),
                pl.BlockSpec(memory_space=pltpu.MemorySpace.SMEM),
                pl.BlockSpec(memory_space=pltpu.MemorySpace.SMEM),
            ],
            out_specs=pl.BlockSpec((1, Cout, r_tile, _LANES),
                                   lambda n, i: (n, 0, i, 0)),
        ),
        compiler_params=pltpu.CompilerParams(
            # both axes independent -> megacore sharding on v7x
            dimension_semantics=("parallel", "parallel"),
            vmem_limit_bytes=32 * 1024 * 1024,
        ),
        cost_estimate=pl.CostEstimate(
            flops=flops, transcendentals=0, bytes_accessed=bytes_accessed),
    )(x4, w1, b1.astype(jnp.float32), w2, b2.astype(jnp.float32))

    out_rows = out4.reshape(N, Cout, hw_pad)
    if hw_pad != HW:
        out_rows = out_rows[:, :, :HW]
    return out_rows.reshape(N, Cout, H, W)


def _reference(x_nchw, w1_t, b1, w2_t, b2, min_value, max_value):
    # Pure-JAX reference of the same pointwise-conv math (torch weight layouts).
    Cin, Cmid = w1_t.shape[0], w1_t.shape[1]
    Cout = w2_t.shape[0]
    w1 = w1_t.reshape(Cin, Cmid)
    w2 = jnp.transpose(w2_t.reshape(Cout, Cmid))
    x = jnp.transpose(x_nchw, (0, 2, 3, 1))           # NHWC
    h = jnp.einsum("nhwc,cm->nhwm", x, w1) + b1
    h = jnp.clip(h, min_value, max_value)              # clamp_min then clamp_max
    y = jnp.einsum("nhwm,mo->nhwo", h, w2) + b2
    return jnp.transpose(y, (0, 3, 1, 2))


if __name__ == "__main__":
    key = jax.random.PRNGKey(0)
    k_x, k_w1, k_b1, k_w2, k_b2, k_x2 = jax.random.split(key, 6)

    Cin, Cmid, Cout = 1, 2, 4
    min_value, max_value = 6.1, 6.2

    # torch-layout parameters: ConvTranspose2d(1, 2, 1) and Conv2d(2, 4, 1)
    w1_t = jax.random.uniform(k_w1, (Cin, Cmid, 1, 1), jnp.float32, -1.0, 1.0)
    b1 = jax.random.uniform(k_b1, (Cmid,), jnp.float32, -1.0, 1.0)
    w2_t = jax.random.uniform(k_w2, (Cout, Cmid, 1, 1), jnp.float32, -0.7, 0.7)
    b2 = jax.random.uniform(k_b2, (Cout,), jnp.float32, -0.7, 0.7)

    # Literal module input: x1 = randn(1, 1, 8, 8)
    x1 = jax.random.normal(k_x, (1, Cin, 8, 8), dtype=jnp.float32)
    out1 = jax.block_until_ready(
        fused_forward(x1, w1_t, b1, w2_t, b2,
                      min_value=min_value, max_value=max_value))
    ref1 = _reference(x1, w1_t, b1, w2_t, b2, min_value, max_value)
    assert out1.shape == (1, Cout, 8, 8), out1.shape
    assert jnp.allclose(out1, ref1, atol=1e-5, rtol=1e-5), "mismatch vs reference"

    # A second small shape exercising batch>1 and the HW-padding path.
    x2 = jax.random.normal(k_x2, (2, Cin, 10, 10), dtype=jnp.float32)
    out2 = jax.block_until_ready(
        fused_forward(x2, w1_t, b1, w2_t, b2,
                      min_value=min_value, max_value=max_value))
    ref2 = _reference(x2, w1_t, b1, w2_t, b2, min_value, max_value)
    assert out2.shape == (2, Cout, 10, 10), out2.shape
    assert jnp.allclose(out2, ref2, atol=1e-5, rtol=1e-5), "mismatch vs reference"

    print("KERNEL_OK")
</pallas_src>

<mosaic_0001>
module attributes {stable_mosaic.version = 11 : i64} {
  func.func @_fused_kernel(%arg0: i32, %arg1: i32, %arg2: memref<1x1x1x128xf32, #tpu.memory_space<vmem>>, %arg3: memref<1x2xf32, #tpu.memory_space<smem>>, %arg4: memref<2xf32, #tpu.memory_space<smem>>, %arg5: memref<2x4xf32, #tpu.memory_space<smem>>, %arg6: memref<4xf32, #tpu.memory_space<smem>>, %arg7: memref<1x4x1x128xf32, #tpu.memory_space<vmem>>) attributes {dimension_semantics = [#tpu.dimension_semantics<parallel>, #tpu.dimension_semantics<parallel>], iteration_bounds = array<i64: 1, 1>, scalar_prefetch = 0 : i64, scratch_operands = 0 : i64, tpu.core_type = #tpu.core_type<tc>, window_params = [{transform_indices = @transform_0, window_bounds = array<i64: 1, 1, 1, 128>}, {transform_indices = @transform_1, window_bounds = array<i64: 1, 2>}, {transform_indices = @transform_2, window_bounds = array<i64: 2>}, {transform_indices = @transform_3, window_bounds = array<i64: 2, 4>}, {transform_indices = @transform_4, window_bounds = array<i64: 4>}, {transform_indices = @transform_5, window_bounds = array<i64: 1, 4, 1, 128>}]} {
    %c0 = arith.constant 0 : index
    %c0_0 = arith.constant 0 : index
    %c0_1 = arith.constant 0 : index
    %c0_2 = arith.constant 0 : index
    %0 = vector.load %arg2[%c0, %c0_0, %c0_1, %c0_2] : memref<1x1x1x128xf32, #tpu.memory_space<vmem>>, vector<1x1x1x128xf32>
    %1 = vector.shape_cast %0 : vector<1x1x1x128xf32> to vector<1x128xf32>
    %c0_3 = arith.constant 0 : index
    %c0_4 = arith.constant 0 : index
    %2 = memref.load %arg3[%c0_3, %c0_4] : memref<1x2xf32, #tpu.memory_space<smem>>
    %3 = vector.broadcast %2 : f32 to vector<1x128xf32>
    %4 = arith.mulf %1, %3 : vector<1x128xf32>
    %c0_5 = arith.constant 0 : index
    %5 = memref.load %arg4[%c0_5] : memref<2xf32, #tpu.memory_space<smem>>
    %6 = vector.broadcast %5 : f32 to vector<1x128xf32>
    %7 = arith.addf %4, %6 : vector<1x128xf32>
    %cst = arith.constant 6.100000e+00 : f32
    %cst_6 = arith.constant 6.1999998 : f32
    %8 = vector.broadcast %cst : f32 to vector<1x128xf32>
    %9 = arith.maximumf %8, %7 : vector<1x128xf32>
    %10 = vector.broadcast %cst_6 : f32 to vector<1x128xf32>
    %11 = arith.minimumf %10, %9 : vector<1x128xf32>
    %c0_7 = arith.constant 0 : index
    %c0_8 = arith.constant 0 : index
    %c0_9 = arith.constant 0 : index
    %c0_10 = arith.constant 0 : index
    %12 = vector.load %arg2[%c0_7, %c0_8, %c0_9, %c0_10] : memref<1x1x1x128xf32, #tpu.memory_space<vmem>>, vector<1x1x1x128xf32>
    %13 = vector.shape_cast %12 : vector<1x1x1x128xf32> to vector<1x128xf32>
    %c0_11 = arith.constant 0 : index
    %c1 = arith.constant 1 : index
    %14 = memref.load %arg3[%c0_11, %c1] : memref<1x2xf32, #tpu.memory_space<smem>>
    %15 = vector.broadcast %14 : f32 to vector<1x128xf32>
    %16 = arith.mulf %13, %15 : vector<1x128xf32>
    %c1_12 = arith.constant 1 : index
    %17 = memref.load %arg4[%c1_12] : memref<2xf32, #tpu.memory_space<smem>>
    %18 = vector.broadcast %17 : f32 to vector<1x128xf32>
    %19 = arith.addf %16, %18 : vector<1x128xf32>
    %cst_13 = arith.constant 6.100000e+00 : f32
    %cst_14 = arith.constant 6.1999998 : f32
    %20 = vector.broadcast %cst_13 : f32 to vector<1x128xf32>
    %21 = arith.maximumf %20, %19 : vector<1x128xf32>
    %22 = vector.broadcast %cst_14 : f32 to vector<1x128xf32>
    %23 = arith.minimumf %22, %21 : vector<1x128xf32>
    %c0_15 = arith.constant 0 : index
    %c0_16 = arith.constant 0 : index
    %24 = memref.load %arg5[%c0_15, %c0_16] : memref<2x4xf32, #tpu.memory_space<smem>>
    %25 = vector.broadcast %24 : f32 to vector<1x128xf32>
    %26 = arith.mulf %11, %25 : vector<1x128xf32>
    %c1_17 = arith.constant 1 : index
    %c0_18 = arith.constant 0 : index
    %27 = memref.load %arg5[%c1_17, %c0_18] : memref<2x4xf32, #tpu.memory_space<smem>>
    %28 = vector.broadcast %27 : f32 to vector<1x128xf32>
    %29 = arith.mulf %23, %28 : vector<1x128xf32>
    %30 = arith.addf %26, %29 : vector<1x128xf32>
    %c0_19 = arith.constant 0 : index
    %31 = memref.load %arg6[%c0_19] : memref<4xf32, #tpu.memory_space<smem>>
    %32 = vector.broadcast %31 : f32 to vector<1x128xf32>
    %33 = arith.addf %30, %32 : vector<1x128xf32>
    %c0_20 = arith.constant 0 : index
    %c0_21 = arith.constant 0 : index
    %c0_22 = arith.constant 0 : index
    %c0_23 = arith.constant 0 : index
    %34 = vector.load %arg7[%c0_20, %c0_21, %c0_22, %c0_23] : memref<1x4x1x128xf32, #tpu.memory_space<vmem>>, vector<1x1x1x128xf32>
    %35 = vector.shape_cast %34 : vector<1x1x1x128xf32> to vector<1x128xf32>
    %36 = vector.shape_cast %33 : vector<1x128xf32> to vector<1x1x1x128xf32>
    tpu.vector_store %arg7[%c0_20, %c0_21, %c0_22, %c0_23], %36 {strides = array<i32>} : memref<1x4x1x128xf32, #tpu.memory_space<vmem>>, vector<1x1x1x128xf32>,
    %c0_24 = arith.constant 0 : index
    %c1_25 = arith.constant 1 : index
    %37 = memref.load %arg5[%c0_24, %c1_25] : memref<2x4xf32, #tpu.memory_space<smem>>
    %38 = vector.broadcast %37 : f32 to vector<1x128xf32>
    %39 = arith.mulf %11, %38 : vector<1x128xf32>
    %c1_26 = arith.constant 1 : index
    %c1_27 = arith.constant 1 : index
    %40 = memref.load %arg5[%c1_26, %c1_27] : memref<2x4xf32, #tpu.memory_space<smem>>
    %41 = vector.broadcast %40 : f32 to vector<1x128xf32>
    %42 = arith.mulf %23, %41 : vector<1x128xf32>
    %43 = arith.addf %39, %42 : vector<1x128xf32>
    %c1_28 = arith.constant 1 : index
    %44 = memref.load %arg6[%c1_28] : memref<4xf32, #tpu.memory_space<smem>>
    %45 = vector.broadcast %44 : f32 to vector<1x128xf32>
    %46 = arith.addf %43, %45 : vector<1x128xf32>
    %c0_29 = arith.constant 0 : index
    %c1_30 = arith.constant 1 : index
    %c0_31 = arith.constant 0 : index
    %c0_32 = arith.constant 0 : index
    %47 = vector.load %arg7[%c0_29, %c1_30, %c0_31, %c0_32] : memref<1x4x1x128xf32, #tpu.memory_space<vmem>>, vector<1x1x1x128xf32>
    %48 = vector.shape_cast %47 : vector<1x1x1x128xf32> to vector<1x128xf32>
    %49 = vector.shape_cast %46 : vector<1x128xf32> to vector<1x1x1x128xf32>
    tpu.vector_store %arg7[%c0_29, %c1_30, %c0_31, %c0_32], %49 {strides = array<i32>} : memref<1x4x1x128xf32, #tpu.memory_space<vmem>>, vector<1x1x1x128xf32>,
    %c0_33 = arith.constant 0 : index
    %c2 = arith.constant 2 : index
    %50 = memref.load %arg5[%c0_33, %c2] : memref<2x4xf32, #tpu.memory_space<smem>>
    %51 = vector.broadcast %50 : f32 to vector<1x128xf32>
    %52 = arith.mulf %11, %51 : vector<1x128xf32>
    %c1_34 = arith.constant 1 : index
    %c2_35 = arith.constant 2 : index
    %53 = memref.load %arg5[%c1_34, %c2_35] : memref<2x4xf32, #tpu.memory_space<smem>>
    %54 = vector.broadcast %53 : f32 to vector<1x128xf32>
    %55 = arith.mulf %23, %54 : vector<1x128xf32>
    %56 = arith.addf %52, %55 : vector<1x128xf32>
    %c2_36 = arith.constant 2 : index
    %57 = memref.load %arg6[%c2_36] : memref<4xf32, #tpu.memory_space<smem>>
    %58 = vector.broadcast %57 : f32 to vector<1x128xf32>
    %59 = arith.addf %56, %58 : vector<1x128xf32>
    %c0_37 = arith.constant 0 : index
    %c2_38 = arith.constant 2 : index
    %c0_39 = arith.constant 0 : index
    %c0_40 = arith.constant 0 : index
    %60 = vector.load %arg7[%c0_37, %c2_38, %c0_39, %c0_40] : memref<1x4x1x128xf32, #tpu.memory_space<vmem>>, vector<1x1x1x128xf32>
    %61 = vector.shape_cast %60 : vector<1x1x1x128xf32> to vector<1x128xf32>
    %62 = vector.shape_cast %59 : vector<1x128xf32> to vector<1x1x1x128xf32>
    tpu.vector_store %arg7[%c0_37, %c2_38, %c0_39, %c0_40], %62 {strides = array<i32>} : memref<1x4x1x128xf32, #tpu.memory_space<vmem>>, vector<1x1x1x128xf32>,
    %c0_41 = arith.constant 0 : index
    %c3 = arith.constant 3 : index
    %63 = memref.load %arg5[%c0_41, %c3] : memref<2x4xf32, #tpu.memory_space<smem>>
    %64 = vector.broadcast %63 : f32 to vector<1x128xf32>
    %65 = arith.mulf %11, %64 : vector<1x128xf32>
    %c1_42 = arith.constant 1 : index
    %c3_43 = arith.constant 3 : index
    %66 = memref.load %arg5[%c1_42, %c3_43] : memref<2x4xf32, #tpu.memory_space<smem>>
    %67 = vector.broadcast %66 : f32 to vector<1x128xf32>
    %68 = arith.mulf %23, %67 : vector<1x128xf32>
    %69 = arith.addf %65, %68 : vector<1x128xf32>
    %c3_44 = arith.constant 3 : index
    %70 = memref.load %arg6[%c3_44] : memref<4xf32, #tpu.memory_space<smem>>
    %71 = vector.broadcast %70 : f32 to vector<1x128xf32>
    %72 = arith.addf %69, %71 : vector<1x128xf32>
    %c0_45 = arith.constant 0 : index
    %c3_46 = arith.constant 3 : index
    %c0_47 = arith.constant 0 : index
    %c0_48 = arith.constant 0 : index
    %73 = vector.load %arg7[%c0_45, %c3_46, %c0_47, %c0_48] : memref<1x4x1x128xf32, #tpu.memory_space<vmem>>, vector<1x1x1x128xf32>
    %74 = vector.shape_cast %73 : vector<1x1x1x128xf32> to vector<1x128xf32>
    %75 = vector.shape_cast %72 : vector<1x128xf32> to vector<1x1x1x128xf32>
    tpu.vector_store %arg7[%c0_45, %c3_46, %c0_47, %c0_48], %75 {strides = array<i32>} : memref<1x4x1x128xf32, #tpu.memory_space<vmem>>, vector<1x1x1x128xf32>,
    return
  }
  func.func @transform_0(%arg0: i32, %arg1: i32) -> (i32, i32, i32, i32) {
    %c0_i32 = arith.constant 0 : i32
    %c0_i32_0 = arith.constant 0 : i32
    %c0_i32_1 = arith.constant 0 : i32
    return %arg0, %c0_i32, %arg1, %c0_i32_0 : i32, i32, i32, i32
  }
  func.func @transform_1(%arg0: i32, %arg1: i32) -> (i32, i32) {
    %c0_i32 = arith.constant 0 : i32
    %c0_i32_0 = arith.constant 0 : i32
    %c0_i32_1 = arith.constant 0 : i32
    return %c0_i32, %c0_i32_0 : i32, i32
  }
  func.func @transform_2(%arg0: i32, %arg1: i32) -> i32 {
    %c0_i32 = arith.constant 0 : i32
    %c0_i32_0 = arith.constant 0 : i32
    return %c0_i32 : i32
  }
  func.func @transform_3(%arg0: i32, %arg1: i32) -> (i32, i32) {
    %c0_i32 = arith.constant 0 : i32
    %c0_i32_0 = arith.constant 0 : i32
    %c0_i32_1 = arith.constant 0 : i32
    return %c0_i32, %c0_i32_0 : i32, i32
  }
  func.func @transform_4(%arg0: i32, %arg1: i32) -> i32 {
    %c0_i32 = arith.constant 0 : i32
    %c0_i32_0 = arith.constant 0 : i32
    return %c0_i32 : i32
  }
  func.func @transform_5(%arg0: i32, %arg1: i32) -> (i32, i32, i32, i32) {
    %c0_i32 = arith.constant 0 : i32
    %c0_i32_0 = arith.constant 0 : i32
    %c0_i32_1 = arith.constant 0 : i32
    return %arg0, %c0_i32, %arg1, %c0_i32_0 : i32, i32, i32, i32
  }
}

</mosaic_0001>

<bundles_post_ra>
// kernel: tpu_custom_call.1
= control target key start
LH: loop header
LB: loop body
LE: loop exit
PB: predicated region body
PF: predicated region fallthrough
CT: control target
= control target key end

     0   :  { %10 = vsyncpa [#allocation3], 0  ;;  %s345_s0 = inlined_call_operand.hbm [shape: f32[1,1,1,128], index: 0, kind: input, shape index: {}]   ;;  %s346_s1 = inlined_call_operand.vmem [shape: f32[1,2], index: 1, kind: input, shape index: {}]   ;;  %s347_s2 = inlined_call_operand.hbm [shape: f32[2], index: 2, kind: input, shape index: {}]   ;;  %s348_s3 = inlined_call_operand.vmem [shape: f32[2,4], index: 3, kind: input, shape index: {}]   ;;  %s349_s4 = inlined_call_operand.vmem [shape: f32[4], index: 4, kind: input, shape index: {}]   ;;  %s350_s5 = inlined_call_operand.hbm [shape: f32[1,4,1,128], index: 5, kind: output, shape index: {}]  }
   0x1   :  { %11 = vsyncpa [#allocation6], 0 }
   0x2   :  { %12 = vsyncpa [#allocation5], 0 }
   0x3   :  { %13 = vsyncpa [#allocation10], 0  ;;  %s49_s20 = sshll.u32 %s348_s3, 4  ;;  %s50_s20 = int_to_ptr.vmem [resolvable:$true] %s49_s20 }
   0x4   :  { %14 = vsyncpa [#allocation4], 0  ;;  %s183_s21 = scalar_lea.vmem %s50_s20, 32  ;;  %p188_p1 = scmp.lt.s32.totalorder %s50_s20, %s50_s20 }
   0x5   :  { %p184_p0 = scmp.ne.s32.totalorder %s50_s20, %s183_s21  ;;  %p189_p2 = scmp.lt.s32.totalorder %s183_s21, %s183_s21 }
   0x7   :  { %p190_p3 = por %p189_p2, %p188_p1 }
   0x9   :  { %p191_p4 = pnand %p190_p3, %p184_p0 }
   0xb   :  { %194 = shalt.err (!%p191_p4)
}
   0xc   :  { %s277_s22 = smov [#allocation9]   ;;  %s278_s23 = smov [#allocation2]  }
   0xd   :  { %52 = dma.vmem_to_smem %s50_s20, 32, %s277_s22, [#allocation10]  }
   0xe   :  { %s21_s24 = sshll.u32 %s278_s23, 4  ;;  %s31_s27 = sshll.u32 %s346_s1, 4  ;;  %s22_s24 = int_to_ptr.vmem [resolvable:$true] %s21_s24  ;;  %s32_s27 = int_to_ptr.vmem [resolvable:$true] %s31_s27 }
   0xf   :  { %s203_s3 = scalar_lea.vmem %s22_s24, 16  ;;  %s207_s28 = scalar_lea.vmem %s22_s24, 32 }
  0x10   :  { %p204_p5 = scmp.ne.s32.totalorder %s22_s24, %s203_s3  ;;  %p208_p6 = scmp.lt.s32.totalorder %s22_s24, %s22_s24 }
  0x11   :  { %p209_p7 = scmp.lt.s32.totalorder %s207_s28, %s203_s3 }
  0x13   :  { %p210_p8 = por %p209_p7, %p208_p6 }
  0x15   :  { %p211_p9 = pnand %p210_p8, %p204_p5 }
  0x17   :  { %214 = shalt.err (!%p211_p9)
}
  0x18   :  { %24 = dma.hbm_to_vmem [thread:$0]  %s345_s0, 16, %s22_s24, [#allocation3]  }
  0x19   :  { %s215_s6 = scalar_lea.vmem %s32_s27, 16  ;;  %p220_p11 = scmp.lt.s32.totalorder %s32_s27, %s32_s27 }
  0x1a   :  { %p216_p10 = scmp.ne.s32.totalorder %s32_s27, %s215_s6  ;;  %p221_p12 = scmp.lt.s32.totalorder %s215_s6, %s215_s6 }
  0x1c   :  { %p222_p13 = por %p221_p12, %p220_p11 }
  0x1e   :  { %p223_p0 = pnand %p222_p13, %p216_p10 }
  0x20   :  { %226 = shalt.err (!%p223_p0)
}
  0x21   :  { %s279_s1 = smov [#allocation7]   ;;  %s280_s7 = smov [#allocation8]  }
  0x22   :  { %34 = dma.vmem_to_smem %s32_s27, 16, %s279_s1, [#allocation6]  }
  0x23   :  { %42 = dma.hbm_to_smem %s347_s2, 16, %s280_s7, [#allocation5]  }
  0x24   :  { %s59_s12 = sshll.u32 %s349_s4, 4  ;;  %s60_s12 = int_to_ptr.vmem [resolvable:$true] %s59_s12 }
  0x25   :  { %s235_s0 = scalar_lea.vmem %s60_s12, 16  ;;  %p240_p2 = scmp.lt.s32.totalorder %s60_s12, %s60_s12 }
  0x26   :  { %p236_p1 = scmp.ne.s32.totalorder %s60_s12, %s235_s0  ;;  %p241_p3 = scmp.lt.s32.totalorder %s235_s0, %s235_s0 }
  0x28   :  { %p242_p4 = por %p241_p3, %p240_p2 }
  0x2a   :  { %p243_p5 = pnand %p242_p4, %p236_p1 }
  0x2c   :  { %246 = shalt.err (!%p243_p5)
}
  0x2d   :  { %s281_s13 = smov [#allocation11]  }
  0x2e   :  { %62 = dma.vmem_to_smem %s60_s12, 16, %s281_s13, [#allocation10]  }
  0x2f   :  { %267 = dma.done.wait [#allocation3], 16  }
  0x30   :  { %268 = vsyncadd [#allocation3], 4294967280 }
  0x31   :  { %269 = dma.done.wait [#allocation6], 16  }
  0x32   :  { %270 = vsyncadd [#allocation6], 4294967280 }
  0x33   :  { %271 = dma.done.wait [#allocation5], 16  }
  0x34   :  { %272 = vsyncadd [#allocation5], 4294967280 }
  0x35   :  { %273 = dma.done.wait [#allocation10], 48  }
  0x36   :  { %274 = vsyncadd [#allocation10], 4294967248 }
  0x37   :  { %78 = sfence }
  0x38   :  { %s80_s2 = sld [smem:[#allocation7]]  ;;  %v79_v0 = vld [vmem:[#allocation2] sm:$0x1]  ;;  %s282_s3 = smov [#allocation12]  }
  0x39   :  { %s83_s4 = sld [smem:[#allocation8]]  ;;  %s148_s28 = sshll.u32 %s282_s3, 4  ;;  %s149_s28 = int_to_ptr.vmem [resolvable:$true] %s148_s28 }
  0x3a   :  { %s163_s14 = sld [smem:[#allocation7 + $0x1]]  ;;  %s247_s29 = scalar_lea.vmem %s149_s28, 64 }
  0x3b   :  { %s164_s15 = sld [smem:[#allocation8 + $0x1]]  ;;  %p248_p6 = scmp.ne.s32.totalorder %s149_s28, %s247_s29 }
  0x3c   :  { %s96_s16 = sld [smem:[#allocation9]]  ;;  %p252_p7 = scmp.lt.s32.totalorder %s149_s28, %s149_s28 }
  0x3d   :  { %s330_s17 = sld [smem:[#allocation9 + $0x80]]  ;;  %p253_p8 = scmp.lt.s32.totalorder %s247_s29, %s247_s29 }
  0x3e   :  { %v81_v1 = vstv %s80_s2  ;;  %s332_s18 = sld [smem:[#allocation11]] }
  0x3f   :  { %v82_v2 = vmul.f32 %v81_v1, %v79_v0  ;;  %v84_v3 = vstv %s83_s4  ;;  %s166_s19 = sld [smem:[#allocation9 + $0x1]]  ;;  %p254_p9 = por %p253_p8, %p252_p7 }
  0x40   :  { %v89_v4 = vstv %s163_s14  ;;  %s167_s20 = sld [smem:[#allocation9 + $0x81]] }
  0x41   :  { %v85_v5 = vadd.f32 %v84_v3, %v82_v2  ;;  %v90_v6 = vmul.f32 %v89_v4, %v79_v0  ;;  %v92_v7 = vstv %s164_s15  ;;  %s334_s21 = sld [smem:[#allocation11 + $0x1]]  ;;  %p255_p10 = pnand %p254_p9, %p248_p6 }
  0x42   :  { %s169_s22 = sld [smem:[#allocation9 + $0x2]]  ;;  %v97_v10 = vstv %s96_s16 }
  0x43   :  { %v86_v8 = vmax.f32 %v85_v5, 6.1  ;;  %v93_v9 = vadd.f32 %v92_v7, %v90_v6  ;;  %s170_s23 = sld [smem:[#allocation9 + $0x82]]  ;;  %v100_v14 = vstv %s330_s17 }
  0x44   :  { %s336_s24 = sld [smem:[#allocation11 + $0x2]]  ;;  %v104_v24 = vstv %s332_s18 }
  0x45   :  { %v87_v11 = vmin.f32 %v86_v8, 6.2  ;;  %v94_v12 = vmax.f32 %v93_v9, 6.1  ;;  %v108_v13 = vstv %s166_s19  ;;  %s172_s25 = sld [smem:[#allocation9 + $0x3]] }
  0x46   :  { %v111_v15 = vstv %s167_s20  ;;  %s173_s26 = sld [smem:[#allocation9 + $0x83]] }
  0x47   :  { %v95_v16 = vmin.f32 %v94_v12, 6.2  ;;  %v98_v17 = vmul.f32 %v97_v10, %v87_v11  ;;  %v109_v18 = vmul.f32 %v108_v13, %v87_v11  ;;  %s174_s27 = sld [smem:[#allocation11 + $0x3]]  ;;  %v115_v25 = vstv %s334_s21 }
  0x48   :  { %v120_v19 = vstv %s169_s22 }
  0x49   :  { %v101_v20 = vmul.f32 %v100_v14, %v95_v16  ;;  %v112_v21 = vmul.f32 %v111_v15, %v95_v16  ;;  %v121_v22 = vmul.f32 %v120_v19, %v87_v11  ;;  %v123_v23 = vstv %s170_s23 }
  0x4a   :  { %v124_v26 = vmul.f32 %v123_v23, %v95_v16  ;;  %v127_v29 = vstv %s336_s24 }
  0x4b   :  { %v102_v27 = vadd.f32 %v101_v20, %v98_v17  ;;  %v113_v28 = vadd.f32 %v112_v21, %v109_v18  ;;  %v132_v30 = vstv %s172_s25 }
  0x4c   :  { %v125_v31 = vadd.f32 %v124_v26, %v121_v22  ;;  %v133_v32 = vmul.f32 %v132_v30, %v87_v11  ;;  %v135_v33 = vstv %s173_s26 }
  0x4d   :  { %v105_v34 = vadd.f32 %v104_v24, %v102_v27  ;;  %v116_v35 = vadd.f32 %v115_v25, %v113_v28  ;;  %v136_v36 = vmul.f32 %v135_v33, %v95_v16  ;;  %v139_v38 = vstv %s174_s27 }
  0x4e   :  { %v128_v37 = vadd.f32 %v127_v29, %v125_v31 }
  0x4f   :  { %106 = vst [vmem:[#allocation12] sm:$0x1] %v105_v34  ;;  %118 = vst [vmem:[#allocation12 + $0x1] sm:$0x1] %v116_v35  ;;  %v137_v39 = vadd.f32 %v136_v36, %v133_v32 }
  0x50   :  { %130 = vst [vmem:[#allocation12 + $0x2] sm:$0x1] %v128_v37 }
  0x51   :  { %v140_v40 = vadd.f32 %v139_v38, %v137_v39 }
  0x53   :  { %142 = vst [vmem:[#allocation12 + $0x3] sm:$0x1] %v140_v40 }
  0x54   :  { %258 = shalt.err (!%p255_p10)
}
  0x55   :  { %s283_s30 = smov 16   ;;  %s284_s6 = smov 1  }
  0x56   :  { %154 = dma.vmem_to_hbm [thread:$0]  %s149_s28, 64, %s350_s5, [#allocation4], %s283_s30, %s283_s30, %s284_s6  }
  0x57   :  { %275 = dma.done.wait [#allocation4], 64  }
  0x58   :  { %276 = vsyncadd [#allocation4], 4294967232 }
  0x59   :  { %158 = vsyncpa [#allocation3], 1 }
  0x5a   :  { %159 = vsyncpa [#allocation4], 1 }
  0x5b   :  { %160 = vsyncpa [#allocation5], 1 }
  0x5c   :  { %161 = vsyncpa [#allocation6], 1 }
  0x5d   :  { %162 = vsyncpa [#allocation10], 1 }

</bundles_post_ra>
